<compile_context>
chip_gen: v7x
topology: tpu7x:2x2x1
jax: 0.10.0
libtpu: 0.0.40
codegen_flags: <defaults>
</compile_context>

<pallas_src>
import functools

import numpy as np
import jax
import jax.numpy as jnp
from jax.experimental import pallas as pl
from jax.experimental.pallas import tpu as pltpu


_LANE = 128


def _copy_kernel(x_ref, o_ref):
    # Elementwise pass-through on the current VMEM tile. A concrete subclass
    # would replace this body with its real compute.
    # TODO(synk): for a pure-copy (no-compute) variant, memory_space=pl.ANY +
    #             pltpu.make_async_copy (HBM->HBM) would skip the vreg hop.
    o_ref[...] = x_ref[...]


def _is_v7x() -> bool:
    try:
        kind = jax.devices()[0].device_kind.lower()
    except Exception:
        return False
    return "v7" in kind


def _min_rows_for_dtype(itemsize: int) -> int:
    # Sub-32-bit dtypes pack along sublanes: need more rows to fill vregs/DMA.
    if itemsize >= 4:
        return 8
    if itemsize == 2:
        return 16
    return 32


def _max_tile_bytes() -> int:
    # v7x: faster HBM (per-step overhead proportionally larger) but only
    # 64 MiB physical VMEM -> 4 MiB tiles (4x multiplier => 16 MiB resident).
    # v5e/v6e: 2 MiB tiles => 8 MiB resident, safe under the 16/32 MiB scoped
    # defaults.
    return (4 if _is_v7x() else 2) * 1024 * 1024


def _choose_layout(total: int, itemsize: int):
    """Pick a lane-dense 2-D view (rows, cols[, pad]) of the flat tensor."""
    min_rows = _min_rows_for_dtype(itemsize)
    candidates = (4096, 2048, 1024, 512, 256, 128)
    for c in candidates:
        if total % c == 0 and total // c >= min_rows:
            return total // c, c, 0
    for c in candidates:
        if total % c == 0:
            return total // c, c, 0
    # Fallback: pad the flattened tensor up to a multiple of 128 so every
    # store stays a full-lane unmasked vst (never cols < 128).
    cols = _LANE
    padded = ((total + cols - 1) // cols) * cols
    return padded // cols, cols, padded - total


def _choose_tiles(rows: int, cols: int, itemsize: int, max_tile_bytes: int):
    """(8,128)-friendly tiles; prefer full-width contiguous slabs."""
    row_bytes = cols * itemsize
    if cols % _LANE != 0 or 32 * row_bytes <= max_tile_bytes:
        # Full-width slab of >=32 rows fits the budget (or full extent is the
        # only legal choice): keep the block contiguous in HBM.
        tile_c = cols
    else:
        tile_c = max(_LANE, ((max_tile_bytes // (32 * itemsize)) // _LANE) * _LANE)
        tile_c = min(tile_c, cols)
    max_r = max(1, max_tile_bytes // (tile_c * itemsize))
    if rows <= max_r:
        tile_r = rows
    else:
        # Multiple of 32 keeps f32 (8,128), bf16 (16,128), int8 (32,128) happy.
        tile_r = min(1024, max(32, (max_r // 32) * 32))
    return tile_r, tile_c


@functools.partial(jax.jit, donate_argnums=0)
def _streaming_copy(x: jax.Array) -> jax.Array:
    """Pallas streaming-copy template (HBM-bandwidth-bound subclass skeleton)."""
    orig_shape = x.shape
    total = int(np.prod(orig_shape)) if orig_shape else 1
    itemsize = jnp.dtype(x.dtype).itemsize

    rows, cols, pad = _choose_layout(total, itemsize)
    tile_r, tile_c = _choose_tiles(rows, cols, itemsize, _max_tile_bytes())

    # Only v7x has 2 TensorCores worth feeding; prefer a row split so each
    # block remains a contiguous HBM range.
    if _is_v7x() and pl.cdiv(rows, tile_r) == 1 and pl.cdiv(cols, tile_c) == 1:
        min_rows = _min_rows_for_dtype(itemsize)
        if rows >= 2 * min_rows and rows % (2 * min_rows) == 0:
            tile_r = rows // 2
        elif cols % 256 == 0:
            tile_c = cols // 2

    grid = (pl.cdiv(rows, tile_r), pl.cdiv(cols, tile_c))

    flat = x.reshape(-1)
    if pad:
        flat = jnp.pad(flat, (0, pad))
    x2d = flat.reshape(rows, cols)

    out2d = pl.pallas_call(
        _copy_kernel,
        out_shape=jax.ShapeDtypeStruct((rows, cols), x.dtype),
        grid=grid,
        in_specs=[pl.BlockSpec((tile_r, tile_c), lambda i, j: (i, j))],
        out_specs=pl.BlockSpec((tile_r, tile_c), lambda i, j: (i, j)),
        # With the input donated at the jit boundary this lets XLA reuse the
        # buffer (it does NOT remove the HBM read+write of the copy itself).
        input_output_aliases={0: 0},
        cost_estimate=pl.CostEstimate(
            flops=0, transcendentals=0,
            bytes_accessed=2 * rows * cols * itemsize),
        compiler_params=pltpu.CompilerParams(
            dimension_semantics=("parallel", "parallel"),
            vmem_limit_bytes=32 * 1024 * 1024,
        ),
    )(x2d)

    out_flat = out2d.reshape(-1)
    if pad:
        out_flat = out_flat[:total]
    return out_flat.reshape(orig_shape)


def base_model_forward(x: jax.Array, *, run_copy_kernel: bool = False) -> jax.Array:
    """BaseModel forward pass.

    The base class defines no compute (forward raises NotImplementedError),
    so the identity fast path returns x untouched — zero HBM traffic, no
    kernel launch. `run_copy_kernel=True` exercises the Pallas streaming-copy
    template that a concrete subclass would fill with real compute.
    """
    if not run_copy_kernel:
        return x
    return _streaming_copy(x)


if __name__ == "__main__":
    key = jax.random.PRNGKey(0)
    # Small NCHW example input consistent with an EEG-style model input.
    x = jax.random.normal(key, (2, 4, 16, 16), dtype=jnp.float32)
    # Keep a host copy for the correctness check: x is donated to the kernel
    # path below and must not be read afterwards.
    x_host = np.asarray(jax.device_get(x))

    # True BaseModel identity path: no kernel, no HBM traffic.
    y_fast = base_model_forward(x)
    assert y_fast.shape == x.shape and y_fast.dtype == x.dtype

    # Kernel-template path (subclass skeleton); input buffer donated.
    y = base_model_forward(x, run_copy_kernel=True)
    jax.block_until_ready(y)

    assert y.shape == x_host.shape and y.dtype == jnp.float32
    assert np.allclose(np.asarray(jax.device_get(y)), x_host)
    # BaseModel owns no parameters; trainable-parameter count is 0.

    print("KERNEL_OK")
</pallas_src>

<mosaic_0001>
module attributes {stable_mosaic.version = 11 : i64} {
  func.func @_copy_kernel(%arg0: i32, %arg1: i32, %arg2: memref<8x256xf32, #tpu.memory_space<vmem>>, %arg3: memref<8x256xf32, #tpu.memory_space<vmem>>) attributes {dimension_semantics = [#tpu.dimension_semantics<parallel>, #tpu.dimension_semantics<parallel>], iteration_bounds = array<i64: 1, 1>, scalar_prefetch = 0 : i64, scratch_operands = 0 : i64, tpu.core_type = #tpu.core_type<tc>, window_params = [{transform_indices = @transform_0, window_bounds = array<i64: 8, 256>}, {transform_indices = @transform_1, window_bounds = array<i64: 8, 256>}]} {
    %c0 = arith.constant 0 : index
    %c0_0 = arith.constant 0 : index
    %0 = vector.load %arg2[%c0, %c0_0] : memref<8x256xf32, #tpu.memory_space<vmem>>, vector<8x256xf32>
    %c0_1 = arith.constant 0 : index
    %c0_2 = arith.constant 0 : index
    %1 = vector.load %arg3[%c0_1, %c0_2] : memref<8x256xf32, #tpu.memory_space<vmem>>, vector<8x256xf32>
    tpu.vector_store %arg3[%c0_1, %c0_2], %0 {strides = array<i32>} : memref<8x256xf32, #tpu.memory_space<vmem>>, vector<8x256xf32>,
    return
  }
  func.func @transform_0(%arg0: i32, %arg1: i32) -> (i32, i32) {
    %c0_i32 = arith.constant 0 : i32
    return %arg0, %arg1 : i32, i32
  }
  func.func @transform_1(%arg0: i32, %arg1: i32) -> (i32, i32) {
    %c0_i32 = arith.constant 0 : i32
    return %arg0, %arg1 : i32, i32
  }
}

</mosaic_0001>

<bundles_post_ra>
// kernel: _streaming_copy.1
= control target key start
LH: loop header
LB: loop body
LE: loop exit
PB: predicated region body
PF: predicated region fallthrough
CT: control target
= control target key end

     0   :  { %s38_s0 = inlined_call_operand.vmem [shape: f32[8,256], index: 0, kind: input, shape index: {}, may-alias: {0,1}]   ;;  %s39_s1 = inlined_call_operand.vmem [shape: f32[8,256], index: 1, kind: output, shape index: {}, may-alias: {0,1}]  }
   0x1   :  { %v8_v0 = vld [vmem:[%s38_s0] sm:$0xff]  ;;  %v9_v1 = vld [vmem:[%s38_s0 + $0x8] sm:$0xff] }
   0x2   :  { %10 = vst [vmem:[%s39_s1] sm:$0xff] %v8_v0  ;;  %11 = vst [vmem:[%s39_s1 + $0x8] sm:$0xff] %v9_v1 }

</bundles_post_ra>
